<compile_context>
chip_gen: v6e
topology: v6e:2x2x1
jax: 0.10.0
libtpu: 0.0.40
codegen_flags: <defaults>
</compile_context>

<pallas_src>
import numpy as np
import jax
import jax.numpy as jnp
from jax.experimental import pallas as pl
from jax.experimental.pallas import tpu as pltpu


def noisy_dqn_kernel(x_ref, w1_ref, w2_ref, w3_ref, vec_ref, o_ref):
    d_out = o_ref.shape[-1]

    # Packed bias slab: one (8, H) f32 block, rows sliced statically.
    b1 = vec_ref[0:1, :]                   # (1, H)
    b2 = vec_ref[1:2, :]                   # (1, H)
    b3 = vec_ref[2:3, 0:d_out]             # (1, d_out)

    # ---- Layer 1: Linear + ReLU (bf16 MXU inputs, f32 accumulate) ----
    h = jnp.dot(x_ref[...], w1_ref[...],
                preferred_element_type=jnp.float32) + b1
    h = jnp.maximum(h, 0.0)

    # ---- Layer 2: pre-composed FactorizedNoisyLinear(H, H) + ReLU ----
    h = jnp.dot(h.astype(jnp.bfloat16), w2_ref[...],
                preferred_element_type=jnp.float32) + b2
    h = jnp.maximum(h, 0.0)

    # ---- Layer 3: pre-composed FactorizedNoisyLinear(H, d_out), no activation ----
    o_ref[...] = (jnp.dot(h.astype(jnp.bfloat16), w3_ref[...],
                          preferred_element_type=jnp.float32) + b3
                  ).astype(o_ref.dtype)


def _pick_block_b(B):
    """Full-batch block (grid=1) on single-core chips; split in two on v7x."""
    try:
        kind = jax.devices()[0].device_kind.lower()
    except Exception:
        kind = ""
    if "v7" in kind and B % 2 == 0 and (B // 2) % 8 == 0:
        return B // 2          # two TensorCores -> one block per core
    return B                   # v5e / v6e: collapse the grid entirely


def noisy_dqn_forward(x, dev, *, block_b=None):
    """x: (B, d_in) f32 or bf16.  dev: dict of pre-composed device parameter arrays."""
    B, d_in = x.shape
    H = dev["w1_t"].shape[1]
    d_out = dev["w3_t"].shape[1]

    if block_b is None:
        block_b = _pick_block_b(B)
    assert B % block_b == 0, "batch must be a multiple of the batch block"
    grid = (B // block_b,)

    # Wrapper-side bf16 cast: halves the only streaming DMA, MXU eats bf16 anyway.
    x_bf = x.astype(jnp.bfloat16)

    const = lambda i: (0, 0)               # weights resident across grid steps
    in_specs = [
        pl.BlockSpec((block_b, d_in), lambda i: (i, 0)),   # x (bf16)
        pl.BlockSpec((d_in, H), const),                    # w1        (bf16)
        pl.BlockSpec((H, H), const),                       # w2_eff    (bf16)
        pl.BlockSpec((H, d_out), const),                   # w3_eff    (bf16)
        pl.BlockSpec((8, H), const),                       # packed biases (f32)
    ]
    out_specs = pl.BlockSpec((block_b, d_out), lambda i: (i, 0))

    flops = 2 * B * (d_in * H + H * H + H * d_out)
    bytes_accessed = (x_bf.size * x_bf.dtype.itemsize
                      + B * d_out * 4
                      + sum(int(v.size) * v.dtype.itemsize for v in dev.values()))

    return pl.pallas_call(
        noisy_dqn_kernel,
        out_shape=jax.ShapeDtypeStruct((B, d_out), jnp.float32),
        grid_spec=pltpu.PrefetchScalarGridSpec(
            num_scalar_prefetch=0,
            grid=grid,
            in_specs=in_specs,
            out_specs=out_specs),
        compiler_params=pltpu.CompilerParams(
            dimension_semantics=("parallel",)),
        cost_estimate=pl.CostEstimate(
            flops=flops, transcendentals=0, bytes_accessed=bytes_accessed),
    )(x_bf, dev["w1_t"], dev["w2_t"], dev["w3_t"], dev["vec"])


def _f_noise(x):
    # FactorizedNoisyLinear noise transform: f(x) = sign(x) * sqrt(|x|)
    return jnp.sign(x) * jnp.sqrt(jnp.abs(x))


def make_params(key, d_in, hidden, d_out):
    """Build PyTorch-equivalent params; pre-compose noise once (per reset_noise)."""
    ks = jax.random.split(key, 10)
    # --- Layer 1: nn.Linear(d_in, hidden), PyTorch default init
    bnd1 = 1.0 / np.sqrt(d_in)
    w1 = jax.random.uniform(ks[0], (hidden, d_in), jnp.float32, -bnd1, bnd1)
    b1 = jax.random.uniform(ks[1], (hidden,), jnp.float32, -bnd1, bnd1)

    # --- Layer 2: FactorizedNoisyLinear(hidden, hidden)
    bnd2 = 1.0 / np.sqrt(hidden)
    sig2 = 0.5 / np.sqrt(hidden)
    w2_mu = jax.random.uniform(ks[2], (hidden, hidden), jnp.float32, -bnd2, bnd2)
    w2_sig = jnp.full((hidden, hidden), sig2, jnp.float32)
    b2_mu = jax.random.uniform(ks[3], (hidden,), jnp.float32, -bnd2, bnd2)
    b2_sig = jnp.full((hidden,), sig2, jnp.float32)
    eps2_in = _f_noise(jax.random.normal(ks[4], (hidden,), jnp.float32))
    eps2_out = _f_noise(jax.random.normal(ks[5], (hidden,), jnp.float32))

    # --- Layer 3: FactorizedNoisyLinear(hidden, d_out)
    bnd3 = 1.0 / np.sqrt(hidden)
    sig3 = 0.5 / np.sqrt(hidden)
    w3_mu = jax.random.uniform(ks[6], (d_out, hidden), jnp.float32, -bnd3, bnd3)
    w3_sig = jnp.full((d_out, hidden), sig3, jnp.float32)
    b3_mu = jax.random.uniform(ks[7], (d_out,), jnp.float32, -bnd3, bnd3)
    b3_sig = jnp.full((d_out,), sig3, jnp.float32)
    eps3_in = _f_noise(jax.random.normal(ks[8], (hidden,), jnp.float32))
    eps3_out = _f_noise(jax.random.normal(ks[9], (d_out,), jnp.float32))

    # --- Effective (noise-composed) weights/biases, PyTorch convention.
    #     Recomputed only when noise is resampled (same cadence as reset_noise()).
    w2_eff = w2_mu + w2_sig * jnp.outer(eps2_out, eps2_in)
    b2_eff = b2_mu + b2_sig * eps2_out
    w3_eff = w3_mu + w3_sig * jnp.outer(eps3_out, eps3_in)
    b3_eff = b3_mu + b3_sig * eps3_out

    # --- Pack the 3 bias vectors into one (8, hidden) f32 slab (layer-3 bias
    #     occupies the first d_out lanes of its row).
    vec = jnp.zeros((8, hidden), jnp.float32)
    vec = vec.at[0, :].set(b1)
    vec = vec.at[1, :].set(b2_eff)
    vec = vec.at[2, :d_out].set(b3_eff)

    # --- Device params: pre-transposed, pre-composed, bf16 for the MXU.
    dev = {
        "w1_t": w1.T.astype(jnp.bfloat16),        # (d_in, H)
        "w2_t": w2_eff.T.astype(jnp.bfloat16),    # (H, H)
        "w3_t": w3_eff.T.astype(jnp.bfloat16),    # (H, d_out)
        "vec": vec,                               # (8, H) f32
    }

    # Un-transposed f32 effective weights for the pure-JAX reference.
    ref = {
        "w1": w1, "b1": b1,
        "w2": w2_eff, "b2": b2_eff,
        "w3": w3_eff, "b3": b3_eff,
    }
    return dev, ref


def reference_forward(x, ref):
    h = jnp.maximum(x @ ref["w1"].T + ref["b1"], 0.0)
    h = jnp.maximum(h @ ref["w2"].T + ref["b2"], 0.0)
    return h @ ref["w3"].T + ref["b3"]


if __name__ == "__main__":
    # A replay-batch forward: 256 states, obs dim 32, hidden 128 (fixed by the
    # module), 8 actions.
    B, D_IN, HIDDEN, D_OUT = 256, 32, 128, 8

    key = jax.random.PRNGKey(0)
    k_x, k_p = jax.random.split(key)
    state = jax.random.normal(k_x, (B, D_IN), jnp.float32)

    dev, ref = make_params(k_p, D_IN, HIDDEN, D_OUT)

    qvals = noisy_dqn_forward(state, dev)
    jax.block_until_ready(qvals)

    expected = reference_forward(state, ref)
    err = float(jnp.max(jnp.abs(qvals - expected)))
    # Tolerance relaxed vs the pure-f32 reference because the kernel feeds the
    # MXU bf16 inputs (f32 accumulation); observed error is ~1e-3 scale.
    if err > 5e-2:
        raise AssertionError(f"mismatch vs f32 JAX reference, max abs err = {err}")

    print("KERNEL_OK")
</pallas_src>

<mosaic_0001>
module attributes {stable_mosaic.version = 11 : i64} {
  func.func @noisy_dqn_kernel(%arg0: i32, %arg1: memref<256x32xbf16, #tpu.memory_space<vmem>>, %arg2: memref<32x128xbf16, #tpu.memory_space<vmem>>, %arg3: memref<128x128xbf16, #tpu.memory_space<vmem>>, %arg4: memref<128x8xbf16, #tpu.memory_space<vmem>>, %arg5: memref<8x128xf32, #tpu.memory_space<vmem>>, %arg6: memref<256x8xf32, #tpu.memory_space<vmem>>) attributes {dimension_semantics = [#tpu.dimension_semantics<parallel>], iteration_bounds = array<i64: 1>, scalar_prefetch = 0 : i64, scratch_operands = 0 : i64, tpu.core_type = #tpu.core_type<tc>, window_params = [{transform_indices = @transform_0, window_bounds = array<i64: 256, 32>}, {pipeline_mode = #tpu.pipeline_mode<synchronous>, transform_indices = @transform_1, window_bounds = array<i64: 32, 128>}, {pipeline_mode = #tpu.pipeline_mode<synchronous>, transform_indices = @transform_2, window_bounds = array<i64: 128, 128>}, {pipeline_mode = #tpu.pipeline_mode<synchronous>, transform_indices = @transform_3, window_bounds = array<i64: 128, 8>}, {pipeline_mode = #tpu.pipeline_mode<synchronous>, transform_indices = @transform_4, window_bounds = array<i64: 8, 128>}, {transform_indices = @transform_5, window_bounds = array<i64: 256, 8>}]} {
    %c0 = arith.constant 0 : index
    %c0_0 = arith.constant 0 : index
    %0 = vector.load %arg5[%c0, %c0_0] : memref<8x128xf32, #tpu.memory_space<vmem>>, vector<1x128xf32>
    %c1 = arith.constant 1 : index
    %c0_1 = arith.constant 0 : index
    %1 = vector.load %arg5[%c1, %c0_1] : memref<8x128xf32, #tpu.memory_space<vmem>>, vector<1x128xf32>
    %c2 = arith.constant 2 : index
    %c0_2 = arith.constant 0 : index
    %2 = vector.load %arg5[%c2, %c0_2] : memref<8x128xf32, #tpu.memory_space<vmem>>, vector<1x8xf32>
    %c0_3 = arith.constant 0 : index
    %c0_4 = arith.constant 0 : index
    %3 = vector.load %arg1[%c0_3, %c0_4] : memref<256x32xbf16, #tpu.memory_space<vmem>>, vector<256x32xbf16>
    %c0_5 = arith.constant 0 : index
    %c0_6 = arith.constant 0 : index
    %4 = vector.load %arg2[%c0_5, %c0_6] : memref<32x128xbf16, #tpu.memory_space<vmem>>, vector<32x128xbf16>
    %cst = arith.constant dense<0.000000e+00> : vector<256x128xf32>
    %5 = tpu.matmul %3, %4, %cst {dimension_numbers = #tpu.dot_dimension_numbers<[1], [0], [0], [1], [0, 0, 1, 1], [], []>} : vector<256x32xbf16>, vector<32x128xbf16>, vector<256x128xf32> -> vector<256x128xf32>
    %6 = vector.broadcast %0 : vector<1x128xf32> to vector<256x128xf32>
    %7 = arith.addf %5, %6 : vector<256x128xf32>
    %cst_7 = arith.constant 0.000000e+00 : f32
    %8 = vector.broadcast %cst_7 : f32 to vector<256x128xf32>
    %9 = arith.maximumf %7, %8 : vector<256x128xf32>
    %10 = arith.truncf %9 : vector<256x128xf32> to vector<256x128xbf16>
    %c0_8 = arith.constant 0 : index
    %c0_9 = arith.constant 0 : index
    %11 = vector.load %arg3[%c0_8, %c0_9] : memref<128x128xbf16, #tpu.memory_space<vmem>>, vector<128x128xbf16>
    %cst_10 = arith.constant dense<0.000000e+00> : vector<256x128xf32>
    %12 = tpu.matmul %10, %11, %cst_10 {dimension_numbers = #tpu.dot_dimension_numbers<[1], [0], [0], [1], [0, 0, 1, 1], [], []>} : vector<256x128xbf16>, vector<128x128xbf16>, vector<256x128xf32> -> vector<256x128xf32>
    %13 = vector.broadcast %1 : vector<1x128xf32> to vector<256x128xf32>
    %14 = arith.addf %12, %13 : vector<256x128xf32>
    %cst_11 = arith.constant 0.000000e+00 : f32
    %15 = vector.broadcast %cst_11 : f32 to vector<256x128xf32>
    %16 = arith.maximumf %14, %15 : vector<256x128xf32>
    %17 = arith.truncf %16 : vector<256x128xf32> to vector<256x128xbf16>
    %c0_12 = arith.constant 0 : index
    %c0_13 = arith.constant 0 : index
    %18 = vector.load %arg4[%c0_12, %c0_13] : memref<128x8xbf16, #tpu.memory_space<vmem>>, vector<128x8xbf16>
    %cst_14 = arith.constant dense<0.000000e+00> : vector<256x8xf32>
    %19 = tpu.matmul %17, %18, %cst_14 {dimension_numbers = #tpu.dot_dimension_numbers<[1], [0], [0], [1], [0, 0, 1, 1], [], []>} : vector<256x128xbf16>, vector<128x8xbf16>, vector<256x8xf32> -> vector<256x8xf32>
    %20 = vector.broadcast %2 : vector<1x8xf32> to vector<256x8xf32>
    %21 = arith.addf %19, %20 : vector<256x8xf32>
    %c0_15 = arith.constant 0 : index
    %c0_16 = arith.constant 0 : index
    %22 = vector.load %arg6[%c0_15, %c0_16] : memref<256x8xf32, #tpu.memory_space<vmem>>, vector<256x8xf32>
    tpu.vector_store %arg6[%c0_15, %c0_16], %21 {strides = array<i32>} : memref<256x8xf32, #tpu.memory_space<vmem>>, vector<256x8xf32>,
    return
  }
  func.func @transform_0(%arg0: i32) -> (i32, i32) {
    %c0_i32 = arith.constant 0 : i32
    %c0_i32_0 = arith.constant 0 : i32
    return %arg0, %c0_i32 : i32, i32
  }
  func.func @transform_1(%arg0: i32) -> (i32, i32) {
    %c0_i32 = arith.constant 0 : i32
    %c0_i32_0 = arith.constant 0 : i32
    %c0_i32_1 = arith.constant 0 : i32
    return %c0_i32, %c0_i32_0 : i32, i32
  }
  func.func @transform_2(%arg0: i32) -> (i32, i32) {
    %c0_i32 = arith.constant 0 : i32
    %c0_i32_0 = arith.constant 0 : i32
    %c0_i32_1 = arith.constant 0 : i32
    return %c0_i32, %c0_i32_0 : i32, i32
  }
  func.func @transform_3(%arg0: i32) -> (i32, i32) {
    %c0_i32 = arith.constant 0 : i32
    %c0_i32_0 = arith.constant 0 : i32
    %c0_i32_1 = arith.constant 0 : i32
    return %c0_i32, %c0_i32_0 : i32, i32
  }
  func.func @transform_4(%arg0: i32) -> (i32, i32) {
    %c0_i32 = arith.constant 0 : i32
    %c0_i32_0 = arith.constant 0 : i32
    %c0_i32_1 = arith.constant 0 : i32
    return %c0_i32, %c0_i32_0 : i32, i32
  }
  func.func @transform_5(%arg0: i32) -> (i32, i32) {
    %c0_i32 = arith.constant 0 : i32
    %c0_i32_0 = arith.constant 0 : i32
    return %arg0, %c0_i32 : i32, i32
  }
}

</mosaic_0001>

<bundles_post_ra>
// kernel: tpu_custom_call.1
= control target key start
LH: loop header
LB: loop body
LE: loop exit
PB: predicated region body
PF: predicated region fallthrough
CT: control target
= control target key end

     0   :  { %vm156_vm0 = vcmask 261120   ;;  %vm920_vm1 = vcmask 64512   ;;  %s1648_s1 = inlined_call_operand.vmem [shape: bf16[32,128], index: 1, kind: input, shape index: {}]   ;;  %s1649_s0 = inlined_call_operand.vmem [shape: bf16[256,32], index: 0, kind: input, shape index: {}]   ;;  %s1650_s2 = inlined_call_operand.vmem [shape: bf16[128,128], index: 2, kind: input, shape index: {}]   ;;  %s1651_s3 = inlined_call_operand.vmem [shape: bf16[128,8], index: 3, kind: input, shape index: {}]   ;;  %s1652_s4 = inlined_call_operand.vmem [shape: f32[8,128], index: 4, kind: input, shape index: {}]   ;;  %s1653_s5 = inlined_call_operand.vmem [shape: f32[256,8], index: 5, kind: output, shape index: {}]  }
   0x1   :  { %v1212_v0 = vld [vmem:[%s1648_s1 + $0x8] sm:$0xff]   ;;  %v1213_v1 = vld [vmem:[%s1648_s1] sm:$0xff]   ;;  %v1216_v4 = vld [vmem:[%s1649_s0 + $0x10] sm:$0xff]  }
   0x2   :  { %1076 = vmatprep.subr.bf16.mxu0 %v1212_v0  ;;  %v1214_v2 = vld [vmem:[%s1649_s0] sm:$0xff]   ;;  %1208 = vmatprep.subr.bf16.mxu1 %v1212_v0  ;;  %v1215_v3 = vld [vmem:[%s1649_s0 + $0x8] sm:$0xff]   ;;  %v1224_v7 = vld [vmem:[%s1649_s0 + $0x50] sm:$0xff]  }
   0x3   :  { %1077 = vmatpush3.bf16.msra.mxu0 %v1212_v0  ;;  %1210 = vmatpush3.bf16.msra.mxu1 %v1212_v0  ;;  %v1222_v5 = vld [vmem:[%s1649_s0 + $0x40] sm:$0xff]   ;;  %v1223_v6 = vld [vmem:[%s1649_s0 + $0x48] sm:$0xff]   ;;  %v1217_v8 = vld [vmem:[%s1649_s0 + $0x18] sm:$0xff]  }
   0x4   :  { %1078 = vmatprep.subr.bf16.mxu0 %v1213_v1  ;;  %1080 = vmatprep.mubr.msk.bf16.mxu0 %vm156_vm0, %v1214_v2  ;;  %v1218_v9 = vld [vmem:[%s1649_s0 + $0x20] sm:$0xff]   ;;  %v1225_v10 = vld [vmem:[%s1649_s0 + $0x58] sm:$0xff]   ;;  %v1231_v13 = vld [vmem:[%s1650_s2 + $0x30] sm:$0xff]  }
   0x5   :  { %1209 = vmatprep.subr.bf16.mxu1 %v1213_v1  ;;  %1096 = vmatprep.mubr.msk.bf16.mxu1 %vm156_vm0, %v1222_v5  ;;  %v1226_v11 = vld [vmem:[%s1649_s0 + $0x60] sm:$0xff]   ;;  %v1230_v12 = vld [vmem:[%s1650_s2 + $0x38] sm:$0xff]   ;;  %v1219_v14 = vld [vmem:[%s1649_s0 + $0x28] sm:$0xff]  }
   0x6   :  { %v1220_v15 = vld [vmem:[%s1649_s0 + $0x30] sm:$0xff]   ;;  %v1232_v16 = vld [vmem:[%s1650_s2 + $0x28] sm:$0xff]   ;;  %v1233_v19 = vld [vmem:[%s1650_s2 + $0x20] sm:$0xff]  }
   0x7   :  { %1079 = vmatpush3.bf16.msra.mxu0 %v1213_v1  ;;  %1211 = vmatpush3.bf16.msra.mxu1 %v1213_v1  ;;  %v1227_v17 = vld [vmem:[%s1649_s0 + $0x68] sm:$0xff]   ;;  %v1228_v18 = vld [vmem:[%s1649_s0 + $0x70] sm:$0xff]   ;;  %v1221_v20 = vld [vmem:[%s1649_s0 + $0x38] sm:$0xff]  }
   0x8   :  { %1112 = vmatprep.subr.bf16.mxu1 %v1230_v12  ;;  %v1234_v21 = vld [vmem:[%s1650_s2 + $0x18] sm:$0xff]   ;;  %v1235_v23 = vld [vmem:[%s1650_s2 + $0x10] sm:$0xff]   ;;  %v1236_v24 = vld [vmem:[%s1650_s2 + $0x8] sm:$0xff]  }
   0x9   :  { %v1229_v22 = vld [vmem:[%s1649_s0 + $0x78] sm:$0xff]   ;;  %v1237_v25 = vld [vmem:[%s1650_s2] sm:$0xff]   ;;  %v1239_v27 = vld [vmem:[%s1651_s3 + $0x30] sm:$0xff]  }
   0xa   :  { %1081 = vmatmul.mubr.msk.bf16.vlgmr.msra.gmra.mxu0 %vm156_vm0, %v1215_v3  ;;  %1097 = vmatmul.mubr.msk.bf16.vlgmr.msra.gmra.mxu1 %vm156_vm0, %v1223_v6  ;;  %v1238_v26 = vld [vmem:[%s1651_s3 + $0x38] sm:$0xff]   ;;  %v1240_v28 = vld [vmem:[%s1651_s3 + $0x28] sm:$0xff]   ;;  %v1241_v29 = vld [vmem:[%s1651_s3 + $0x20] sm:$0xff]  }
   0xb   :  { %1084 = vmatprep.mubr.msk.bf16.mxu0 %vm156_vm0, %v1216_v4  ;;  %1100 = vmatprep.mubr.msk.bf16.mxu1 %vm156_vm0, %v1224_v7  ;;  %v1242_v30 = vld [vmem:[%s1651_s3 + $0x18] sm:$0xff]   ;;  %v1388_v33 = vld [vmem:[%s1652_s4] ss:$0 sm:$0xff] }
   0xc   :  { %1113 = vmatpush3.bf16.msra.mxu1 %v1230_v12  ;;  %1160 = vmatprep.subr.bf16.mxu0 %v1238_v26 }
   0xd   :  { %1114 = vmatprep.subr.bf16.mxu1 %v1231_v13  ;;  %1161 = vmatpush3.bf16.msra.mxu0 %v1238_v26 }
   0xe   :  { %1162 = vmatprep.subr.bf16.mxu0 %v1239_v27 }
  0x10   :  { %1115 = vmatpush3.bf16.msra.mxu1 %v1231_v13 }
  0x11   :  { %1116 = vmatprep.subr.bf16.mxu1 %v1232_v16  ;;  %1163 = vmatpush3.bf16.msra.mxu0 %v1239_v27 }
  0x12   :  { %1085 = vmatmul.mubr.msk.bf16.gmra.mxu0 %vm156_vm0, %v1217_v8  ;;  %1101 = vmatmul.mubr.msk.bf16.gmra.mxu1 %vm156_vm0, %v1225_v10 }
  0x13   :  { %1088 = vmatprep.mubr.msk.bf16.mxu0 %vm156_vm0, %v1218_v9  ;;  %1104 = vmatprep.mubr.msk.bf16.mxu1 %vm156_vm0, %v1226_v11 }
  0x14   :  { %1117 = vmatpush3.bf16.msra.mxu1 %v1232_v16  ;;  %1164 = vmatprep.subr.bf16.mxu0 %v1240_v28 }
  0x15   :  { %1118 = vmatprep.subr.bf16.mxu1 %v1233_v19  ;;  %1165 = vmatpush3.bf16.msra.mxu0 %v1240_v28 }
  0x16   :  { %1166 = vmatprep.subr.bf16.mxu0 %v1241_v29 }
  0x18   :  { %1119 = vmatpush3.bf16.msra.mxu1 %v1233_v19 }
  0x19   :  { %1120 = vmatprep.subr.bf16.mxu1 %v1234_v21  ;;  %1167 = vmatpush3.bf16.msra.mxu0 %v1241_v29 }
  0x1a   :  { %1089 = vmatmul.mubr.msk.bf16.gmra.mxu0 %vm156_vm0, %v1219_v14  ;;  %1105 = vmatmul.mubr.msk.bf16.gmra.mxu1 %vm156_vm0, %v1227_v17 }
  0x1b   :  { %1092 = vmatprep.mubr.msk.bf16.mxu0 %vm156_vm0, %v1220_v15  ;;  %1108 = vmatprep.mubr.msk.bf16.mxu1 %vm156_vm0, %v1228_v18 }
  0x1c   :  { %1121 = vmatpush3.bf16.msra.mxu1 %v1234_v21  ;;  %1168 = vmatprep.subr.bf16.mxu0 %v1242_v30 }
  0x1d   :  { %1122 = vmatprep.subr.bf16.mxu1 %v1235_v23  ;;  %1169 = vmatpush3.bf16.msra.mxu0 %v1242_v30 }
  0x20   :  { %1123 = vmatpush3.bf16.msra.mxu1 %v1235_v23 }
  0x21   :  { %1124 = vmatprep.subr.bf16.mxu1 %v1236_v24 }
  0x22   :  { %1093 = vmatmul.mubr.msk.bf16.gmra.mxu0 %vm156_vm0, %v1221_v20  ;;  %1109 = vmatmul.mubr.msk.bf16.gmra.mxu1 %vm156_vm0, %v1229_v22 }
  0x24   :  { %1125 = vmatpush3.bf16.msra.mxu1 %v1236_v24 }
  0x25   :  { %1126 = vmatprep.subr.bf16.mxu1 %v1237_v25 }
  0x28   :  { %1127 = vmatpush3.bf16.msra.mxu1 %v1237_v25 }
  0xca   :  { %v1082_v31 = vpop.f32.mrf.mxu0  ;;  %v1390_v34 = vpop.f32.mrf.mxu1 }
  0xcb   :  { %v248_v39 = vadd.f32 %v1082_v31, %v1388_v33 }
  0xcc   :  { %v239_v32 = vpop.f32.mrf.mxu0  ;;  %v303_v38 = vpop.f32.mrf.mxu1 }
  0xcd   :  { %v240_v36 = vadd.f32 %v1388_v33, %v239_v32  ;;  %v368_v48 = vmax.f32 %v248_v39, 0.0  ;;  %v304_v21 = vadd.f32 %v1388_v33, %v303_v38 }
  0xce   :  { %v1083_v35 = vpop.f32.mrf.mxu0  ;;  %v1396_v42 = vpop.f32.mrf.mxu1 }
  0xcf   :  { %v251_v37 = vadd.f32 %v1083_v35, %v1388_v33  ;;  %v366_v45 = vmax.f32 %v240_v36, 0.0  ;;  %v382_v30 = vmax.f32 %v304_v21, 0.0  ;;  %v1449_v21 = vld [vmem:[%s1652_s4 + $0x1] ss:$0 sm:$0xff] }
  0xd0   :  { %v242_v40 = vpop.f32.mrf.mxu0  ;;  %v306_v47 = vpop.f32.mrf.mxu1 }
  0xd1   :  { %v243_v41 = vadd.f32 %v1388_v33, %v242_v40  ;;  %v369_v43 = vmax.f32 %v251_v37, 0.0  ;;  %v307_v22 = vadd.f32 %v1388_v33, %v306_v47  ;;  %v315_v47 = vadd.f32 %v1396_v42, %v1388_v33 }
  0xd2   :  { %v1086_v44 = vpop.f32.mrf.mxu0  ;;  %v1398_v51 = vpop.f32.mrf.mxu1 }
  0xd3   :  { %v367_v46 = vmax.f32 %v243_v41, 0.0  ;;  %v399_v52 = vpack.c.bf16 %v369_v43, %v368_v48  ;;  %v264_v57 = vadd.f32 %v1086_v44, %v1388_v33  ;;  %v383_v32 = vmax.f32 %v307_v22, 0.0 }
  0xd4   :  { %v255_v49 = vpop.f32.mrf.mxu0  ;;  %v319_v56 = vpop.f32.mrf.mxu1 }
  0xd5   :  { %v398_v50 = vpack.c.bf16 %v367_v46, %v366_v45  ;;  %v256_v54 = vadd.f32 %v1388_v33, %v255_v49  ;;  %v372_v2 = vmax.f32 %v264_v57, 0.0  ;;  %v406_v41 = vpack.c.bf16 %v383_v32, %v382_v30 }
  0xd6   :  { %v1087_v53 = vpop.f32.mrf.mxu0  ;;  %v1404_v60 = vpop.f32.mrf.mxu1  ;;  %v320_v43 = vadd.f32 %v1388_v33, %v319_v56  ;;  %v312_v45 = vadd.f32 %v1390_v34, %v1388_v33  ;;  %v328_v34 = vadd.f32 %v1398_v51, %v1388_v33 }
  0xd7   :  { %v267_v55 = vadd.f32 %v1087_v53, %v1388_v33  ;;  %1128 = vmatprep.mubr.bf16.mxu1 %v398_v50  ;;  %v370_v63 = vmax.f32 %v256_v54, 0.0  ;;  %v385_v53 = vmax.f32 %v315_v47, 0.0  ;;  %v331_v42 = vadd.f32 %v1404_v60, %v1388_v33 }
  0xd8   :  { %v258_v58 = vpop.f32.mrf.mxu0  ;;  %1129 = vmatmul.mubr.bf16.vlgmr.msra.gmra.mxu1 %v399_v52  ;;  %v322_v1 = vpop.f32.mrf.mxu1  ;;  %v386_v49 = vmax.f32 %v320_v43, 0.0  ;;  %v384_v52 = vmax.f32 %v312_v45, 0.0 }
  0xd9   :  { %v259_v59 = vadd.f32 %v1388_v33, %v258_v58  ;;  %v373_v61 = vmax.f32 %v267_v55, 0.0  ;;  %v323_v44 = vadd.f32 %v1388_v33, %v322_v1 }
  0xda   :  { %v1090_v62 = vpop.f32.mrf.mxu0  ;;  %v1406_v7 = vpop.f32.mrf.mxu1  ;;  %v407_v58 = vpack.c.bf16 %v385_v53, %v384_v52 }
  0xdb   :  { %v371_v0 = vmax.f32 %v259_v59, 0.0  ;;  %v401_v5 = vpack.c.bf16 %v373_v61, %v372_v2  ;;  %v280_v10 = vadd.f32 %v1090_v62, %v1388_v33  ;;  %v387_v50 = vmax.f32 %v323_v44, 0.0 }
  0xdc   :  { %v271_v3 = vpop.f32.mrf.mxu0  ;;  %v335_v15 = vpop.f32.mrf.mxu1  ;;  %v344_v51 = vadd.f32 %v1406_v7, %v1388_v33  ;;  %v1243_v7 = vld [vmem:[%s1651_s3 + $0x10] sm:$0xff]  }
  0xdd   :  { %v400_v4 = vpack.c.bf16 %v371_v0, %v370_v63  ;;  %v272_v8 = vadd.f32 %v1388_v33, %v271_v3  ;;  %v376_v18 = vmax.f32 %v280_v10, 0.0  ;;  %v408_v55 = vpack.c.bf16 %v387_v50, %v386_v49  ;;  %1170 = vmatprep.subr.bf16.mxu0 %v1243_v7 }
  0xde   :  { %v1091_v6 = vpop.f32.mrf.mxu0  ;;  %v1107_v25 = vpop.f32.mrf.mxu1  ;;  %v336_v56 = vadd.f32 %v1388_v33, %v335_v15  ;;  %v388_v63 = vmax.f32 %v328_v34, 0.0  ;;  %v389_v0 = vmax.f32 %v331_v42, 0.0  ;;  %1171 = vmatpush3.bf16.msra.mxu0 %v1243_v7 }
  0xdf   :  { %v283_v9 = vadd.f32 %v1091_v6, %v1388_v33  ;;  %1132 = vmatprep.mubr.bf16.mxu1 %v400_v4  ;;  %v374_v16 = vmax.f32 %v272_v8, 0.0  ;;  %v347_v6 = vadd.f32 %v1107_v25, %v1388_v33 }
  0xe0   :  { %v274_v11 = vpop.f32.mrf.mxu0  ;;  %1133 = vmatmul.mubr.bf16.gmra.mxu1 %v401_v5  ;;  %v338_v36 = vpop.f32.mrf.mxu1  ;;  %v390_v61 = vmax.f32 %v336_v56, 0.0  ;;  %v409_v5 = vpack.c.bf16 %v389_v0, %v388_v63 }
  0xe1   :  { %v275_v12 = vadd.f32 %v1388_v33, %v274_v11  ;;  %v377_v13 = vmax.f32 %v283_v9, 0.0  ;;  %v339_v57 = vadd.f32 %v1388_v33, %v338_v36  ;;  %v392_v9 = vmax.f32 %v344_v51, 0.0 }
  0xe2   :  { %v1094_v14 = vpop.f32.mrf.mxu0  ;;  %v1110_v48 = vpop.f32.mrf.mxu1  ;;  %v393_v10 = vmax.f32 %v347_v6, 0.0 }
  0xe3   :  { %v375_v17 = vmax.f32 %v275_v12, 0.0  ;;  %v403_v23 = vpack.c.bf16 %v377_v13, %v376_v18  ;;  %v296_v28 = vadd.f32 %v1094_v14, %v1388_v33  ;;  %v391_v62 = vmax.f32 %v339_v57, 0.0  ;;  %v1244_v18 = vld [vmem:[%s1651_s3 + $0x8] sm:$0xff]  }
  0xe4   :  { %v287_v19 = vpop.f32.mrf.mxu0  ;;  %v351_v54 = vpop.f32.mrf.mxu1  ;;  %v411_v12 = vpack.c.bf16 %v393_v10, %v392_v9  ;;  %v360_v13 = vadd.f32 %v1110_v48, %v1388_v33  ;;  %1172 = vmatprep.subr.bf16.mxu0 %v1244_v18 }
  0xe5   :  { %v402_v20 = vpack.c.bf16 %v375_v17, %v374_v16  ;;  %v288_v26 = vadd.f32 %v1388_v33, %v287_v19  ;;  %v380_v39 = vmax.f32 %v296_v28, 0.0  ;;  %v410_v2 = vpack.c.bf16 %v391_v62, %v390_v61  ;;  %1173 = vmatpush3.bf16.msra.mxu0 %v1244_v18 }
  0xe6   :  { %v1095_v24 = vpop.f32.mrf.mxu0  ;;  %v1111_v59 = vpop.f32.mrf.mxu1  ;;  %v352_v3 = vadd.f32 %v1388_v33, %v351_v54  ;;  %v396_v15 = vmax.f32 %v360_v13, 0.0 }
  0xe7   :  { %v299_v27 = vadd.f32 %v1095_v24, %v1388_v33  ;;  %1136 = vmatprep.mubr.bf16.mxu1 %v402_v20  ;;  %v378_v37 = vmax.f32 %v288_v26, 0.0  ;;  %v363_v14 = vadd.f32 %v1111_v59, %v1388_v33 }
  0xe8   :  { %v290_v29 = vpop.f32.mrf.mxu0  ;;  %1137 = vmatmul.mubr.bf16.gmra.mxu1 %v403_v23  ;;  %v354_v1 = vpop.f32.mrf.mxu1  ;;  %v394_v60 = vmax.f32 %v352_v3, 0.0 }
  0xe9   :  { %v291_v31 = vadd.f32 %v1388_v33, %v290_v29  ;;  %v381_v35 = vmax.f32 %v299_v27, 0.0  ;;  %v355_v4 = vadd.f32 %v1388_v33, %v354_v1  ;;  %v397_v16 = vmax.f32 %v363_v14, 0.0  ;;  %v1245_v33 = vld [vmem:[%s1651_s3] sm:$0xff]  }
  0xea   :  { %1174 = vmatprep.subr.bf16.mxu0 %v1245_v33 }
  0xeb   :  { %v379_v38 = vmax.f32 %v291_v31, 0.0  ;;  %v405_v46 = vpack.c.bf16 %v381_v35, %v380_v39  ;;  %v395_v8 = vmax.f32 %v355_v4, 0.0  ;;  %v413_v17 = vpack.c.bf16 %v397_v16, %v396_v15  ;;  %1175 = vmatpush3.bf16.msra.mxu0 %v1245_v33 }
  0xed   :  { %v404_v40 = vpack.c.bf16 %v379_v38, %v378_v37  ;;  %v412_v11 = vpack.c.bf16 %v395_v8, %v394_v60 }
  0xef   :  { %1140 = vmatprep.mubr.bf16.mxu1 %v404_v40 }
  0xf0   :  { %1141 = vmatmul.mubr.bf16.gmra.mxu1 %v405_v46 }
  0xf1   :  { %1144 = vmatprep.mubr.bf16.mxu1 %v406_v41 }
  0xf8   :  { %1145 = vmatmul.mubr.bf16.gmra.mxu1 %v407_v58 }
  0xf9   :  { %1148 = vmatprep.mubr.bf16.mxu1 %v408_v55 }
 0x100   :  { %1149 = vmatmul.mubr.bf16.gmra.mxu1 %v409_v5 }
 0x101   :  { %1152 = vmatprep.mubr.bf16.mxu1 %v410_v2 }
 0x108   :  { %1153 = vmatmul.mubr.bf16.gmra.mxu1 %v411_v12 }
 0x109   :  { %1156 = vmatprep.mubr.bf16.mxu1 %v412_v11 }
 0x110   :  { %1157 = vmatmul.mubr.bf16.gmra.mxu1 %v413_v17 }
 0x198   :  { %v1130_v19 = vpop.f32.mrf.mxu1 }
 0x199   :  { %v525_v25 = vadd.f32 %v1130_v19, %v1449_v21 }
 0x19a   :  { %v516_v20 = vpop.f32.mrf.mxu1 }
 0x19b   :  { %v517_v23 = vadd.f32 %v1449_v21, %v516_v20  ;;  %v645_v32 = vmax.f32 %v525_v25, 0.0 }
 0x19c   :  { %v1131_v22 = vpop.f32.mrf.mxu1 }
 0x19d   :  { %v528_v24 = vadd.f32 %v1131_v22, %v1449_v21  ;;  %v643_v30 = vmax.f32 %v517_v23, 0.0 }
 0x19e   :  { %v519_v26 = vpop.f32.mrf.mxu1 }
 0x19f   :  { %v520_v27 = vadd.f32 %v1449_v21, %v519_v26  ;;  %v646_v28 = vmax.f32 %v528_v24, 0.0 }
 0x1a0   :  { %v1134_v29 = vpop.f32.mrf.mxu1 }
 0x1a1   :  { %v644_v31 = vmax.f32 %v520_v27, 0.0  ;;  %v676_v37 = vpack.c.bf16 %v646_v28, %v645_v32  ;;  %v541_v41 = vadd.f32 %v1134_v29, %v1449_v21 }
 0x1a2   :  { %v532_v35 = vpop.f32.mrf.mxu1 }
 0x1a3   :  { %v675_v36 = vpack.c.bf16 %v644_v31, %v643_v30  ;;  %v533_v39 = vadd.f32 %v1449_v21, %v532_v35  ;;  %v649_v49 = vmax.f32 %v541_v41, 0.0 }
 0x1a4   :  { %v1135_v38 = vpop.f32.mrf.mxu1 }
 0x1a5   :  { %v544_v40 = vadd.f32 %v1135_v38, %v1449_v21  ;;  %1176 = vmatprep.mubr.bf16.mxu0 %v675_v36  ;;  %v647_v47 = vmax.f32 %v533_v39, 0.0 }
 0x1a6   :  { %v535_v43 = vpop.f32.mrf.mxu1  ;;  %1177 = vmatmul.mubr.bf16.vlgmr.msra.gmra.mxu0 %v676_v37 }
 0x1a7   :  { %v536_v44 = vadd.f32 %v1449_v21, %v535_v43  ;;  %v650_v45 = vmax.f32 %v544_v40, 0.0 }
 0x1a8   :  { %v1138_v46 = vpop.f32.mrf.mxu1 }
 0x1a9   :  { %v648_v48 = vmax.f32 %v536_v44, 0.0  ;;  %v678_v53 = vpack.c.bf16 %v650_v45, %v649_v49  ;;  %v557_v57 = vadd.f32 %v1138_v46, %v1449_v21 }
 0x1aa   :  { %v548_v50 = vpop.f32.mrf.mxu1 }
 0x1ab   :  { %v677_v52 = vpack.c.bf16 %v648_v48, %v647_v47  ;;  %v549_v55 = vadd.f32 %v1449_v21, %v548_v50  ;;  %v653_v63 = vmax.f32 %v557_v57, 0.0 }
 0x1ac   :  { %v1139_v54 = vpop.f32.mrf.mxu1 }
 0x1ad   :  { %v560_v56 = vadd.f32 %v1139_v54, %v1449_v21  ;;  %1180 = vmatprep.mubr.bf16.mxu0 %v677_v52  ;;  %v651_v61 = vmax.f32 %v549_v55, 0.0 }
 0x1ae   :  { %v551_v58 = vpop.f32.mrf.mxu1  ;;  %1181 = vmatmul.mubr.bf16.gmra.mxu0 %v678_v53 }
 0x1af   :  { %v552_v34 = vadd.f32 %v1449_v21, %v551_v58  ;;  %v654_v42 = vmax.f32 %v560_v56, 0.0 }
 0x1b0   :  { %v1142_v59 = vpop.f32.mrf.mxu1 }
 0x1b1   :  { %v652_v62 = vmax.f32 %v552_v34, 0.0  ;;  %v680_v2 = vpack.c.bf16 %v654_v42, %v653_v63  ;;  %v573_v51 = vadd.f32 %v1142_v59, %v1449_v21 }
 0x1b2   :  { %v564_v0 = vpop.f32.mrf.mxu1 }
 0x1b3   :  { %v679_v1 = vpack.c.bf16 %v652_v62, %v651_v61  ;;  %v565_v4 = vadd.f32 %v1449_v21, %v564_v0  ;;  %v657_v12 = vmax.f32 %v573_v51, 0.0 }
 0x1b4   :  { %v1143_v3 = vpop.f32.mrf.mxu1 }
 0x1b5   :  { %v576_v5 = vadd.f32 %v1143_v3, %v1449_v21  ;;  %1184 = vmatprep.mubr.bf16.mxu0 %v679_v1  ;;  %v655_v10 = vmax.f32 %v565_v4, 0.0 }
 0x1b6   :  { %v567_v6 = vpop.f32.mrf.mxu1  ;;  %1185 = vmatmul.mubr.bf16.gmra.mxu0 %v680_v2 }
 0x1b7   :  { %v568_v60 = vadd.f32 %v1449_v21, %v567_v6  ;;  %v658_v8 = vmax.f32 %v576_v5, 0.0 }
 0x1b8   :  { %v1146_v9 = vpop.f32.mrf.mxu1 }
 0x1b9   :  { %v656_v11 = vmax.f32 %v568_v60, 0.0  ;;  %v682_v15 = vpack.c.bf16 %v658_v8, %v657_v12  ;;  %v589_v18 = vadd.f32 %v1146_v9, %v1449_v21  ;;  %v1486_v60 = vld [vmem:[%s1652_s4 + $0x2] ss:$0 sm:$0xff] }
 0x1ba   :  { %v580_v13 = vpop.f32.mrf.mxu1 }
 0x1bb   :  { %v681_v14 = vpack.c.bf16 %v656_v11, %v655_v10  ;;  %v581_v17 = vadd.f32 %v1449_v21, %v580_v13  ;;  %v661_v25 = vmax.f32 %v589_v18, 0.0 }
 0x1bc   :  { %v1147_v16 = vpop.f32.mrf.mxu1 }
 0x1bd   :  { %v592_v7 = vadd.f32 %v1147_v16, %v1449_v21  ;;  %1188 = vmatprep.mubr.bf16.mxu0 %v681_v14  ;;  %v659_v23 = vmax.f32 %v581_v17, 0.0 }
 0x1be   :  { %v583_v33 = vpop.f32.mrf.mxu1  ;;  %1189 = vmatmul.mubr.bf16.gmra.mxu0 %v682_v15 }
 0x1bf   :  { %v584_v19 = vadd.f32 %v1449_v21, %v583_v33  ;;  %v662_v20 = vmax.f32 %v592_v7, 0.0 }
 0x1c0   :  { %v1150_v22 = vpop.f32.mrf.mxu1 }
 0x1c1   :  { %v660_v24 = vmax.f32 %v584_v19, 0.0  ;;  %v684_v28 = vpack.c.bf16 %v662_v20, %v661_v25  ;;  %v605_v32 = vadd.f32 %v1150_v22, %v1449_v21 }
 0x1c2   :  { %v596_v26 = vpop.f32.mrf.mxu1 }
 0x1c3   :  { %v683_v27 = vpack.c.bf16 %v660_v24, %v659_v23  ;;  %v597_v30 = vadd.f32 %v1449_v21, %v596_v26  ;;  %v665_v41 = vmax.f32 %v605_v32, 0.0 }
 0x1c4   :  { %v1151_v29 = vpop.f32.mrf.mxu1 }
 0x1c5   :  { %v608_v31 = vadd.f32 %v1151_v29, %v1449_v21  ;;  %1192 = vmatprep.mubr.bf16.mxu0 %v683_v27  ;;  %v663_v39 = vmax.f32 %v597_v30, 0.0 }
 0x1c6   :  { %v599_v35 = vpop.f32.mrf.mxu1  ;;  %1193 = vmatmul.mubr.bf16.gmra.mxu0 %v684_v28 }
 0x1c7   :  { %v600_v36 = vadd.f32 %v1449_v21, %v599_v35  ;;  %v666_v37 = vmax.f32 %v608_v31, 0.0 }
 0x1c8   :  { %v1154_v38 = vpop.f32.mrf.mxu1 }
 0x1c9   :  { %v664_v40 = vmax.f32 %v600_v36, 0.0  ;;  %v686_v45 = vpack.c.bf16 %v666_v37, %v665_v41  ;;  %v621_v49 = vadd.f32 %v1154_v38, %v1449_v21 }
 0x1ca   :  { %v612_v43 = vpop.f32.mrf.mxu1 }
 0x1cb   :  { %v685_v44 = vpack.c.bf16 %v664_v40, %v663_v39  ;;  %v613_v47 = vadd.f32 %v1449_v21, %v612_v43  ;;  %v669_v57 = vmax.f32 %v621_v49, 0.0 }
 0x1cc   :  { %v1155_v46 = vpop.f32.mrf.mxu1 }
 0x1cd   :  { %v624_v48 = vadd.f32 %v1155_v46, %v1449_v21  ;;  %1196 = vmatprep.mubr.bf16.mxu0 %v685_v44  ;;  %v667_v55 = vmax.f32 %v613_v47, 0.0 }
 0x1ce   :  { %v615_v50 = vpop.f32.mrf.mxu1  ;;  %1197 = vmatmul.mubr.bf16.gmra.mxu0 %v686_v45 }
 0x1cf   :  { %v616_v52 = vadd.f32 %v1449_v21, %v615_v50  ;;  %v670_v53 = vmax.f32 %v624_v48, 0.0 }
 0x1d0   :  { %v1158_v54 = vpop.f32.mrf.mxu1 }
 0x1d1   :  { %v668_v56 = vmax.f32 %v616_v52, 0.0  ;;  %v688_v42 = vpack.c.bf16 %v670_v53, %v669_v57  ;;  %v637_v63 = vadd.f32 %v1158_v54, %v1449_v21 }
 0x1d2   :  { %v628_v58 = vpop.f32.mrf.mxu1 }
 0x1d3   :  { %v687_v34 = vpack.c.bf16 %v668_v56, %v667_v55  ;;  %v629_v61 = vadd.f32 %v1449_v21, %v628_v58  ;;  %v673_v5 = vmax.f32 %v637_v63, 0.0 }
 0x1d4   :  { %v1159_v59 = vpop.f32.mrf.mxu1 }
 0x1d5   :  { %v640_v62 = vadd.f32 %v1159_v59, %v1449_v21  ;;  %1200 = vmatprep.mubr.bf16.mxu0 %v687_v34  ;;  %v671_v3 = vmax.f32 %v629_v61, 0.0 }
 0x1d6   :  { %v631_v0 = vpop.f32.mrf.mxu1  ;;  %1201 = vmatmul.mubr.bf16.gmra.mxu0 %v688_v42 }
 0x1d7   :  { %v632_v1 = vadd.f32 %v1449_v21, %v631_v0  ;;  %v674_v2 = vmax.f32 %v640_v62, 0.0 }
 0x1d9   :  { %v672_v4 = vmax.f32 %v632_v1, 0.0  ;;  %v690_v6 = vpack.c.bf16 %v674_v2, %v673_v5 }
 0x1db   :  { %v689_v51 = vpack.c.bf16 %v672_v4, %v671_v3 }
 0x1dd   :  { %1204 = vmatprep.mubr.bf16.mxu0 %v689_v51 }
 0x1de   :  { %1205 = vmatmul.mubr.bf16.gmra.mxu0 %v690_v6 }
 0x266   :  { %v1178_v8 = vpop.f32.mrf.mxu0 }
 0x267   :  { %v802_v9 = vadd.f32 %v1178_v8, %v1486_v60 }
 0x268   :  { %v793_v10 = vpop.f32.mrf.mxu0 }
 0x269   :  { %923 = vst.msk [vmem:[%s1653_s5 + $0x10] sm:$0xff] %vm920_vm1, %v802_v9  ;;  %v794_v21 = vadd.f32 %v1486_v60, %v793_v10 }
 0x26a   :  { %v1179_v11 = vpop.f32.mrf.mxu0 }
 0x26b   :  { %921 = vst.msk [vmem:[%s1653_s5] sm:$0xff] %vm920_vm1, %v794_v21  ;;  %v805_v12 = vadd.f32 %v1179_v11, %v1486_v60 }
 0x26c   :  { %v796_v13 = vpop.f32.mrf.mxu0 }
 0x26d   :  { %924 = vst.msk [vmem:[%s1653_s5 + $0x18] sm:$0xff] %vm920_vm1, %v805_v12  ;;  %v797_v14 = vadd.f32 %v1486_v60, %v796_v13 }
 0x26e   :  { %v1182_v15 = vpop.f32.mrf.mxu0 }
 0x26f   :  { %922 = vst.msk [vmem:[%s1653_s5 + $0x8] sm:$0xff] %vm920_vm1, %v797_v14  ;;  %v818_v16 = vadd.f32 %v1182_v15, %v1486_v60 }
 0x270   :  { %v809_v17 = vpop.f32.mrf.mxu0 }
 0x271   :  { %927 = vst.msk [vmem:[%s1653_s5 + $0x30] sm:$0xff] %vm920_vm1, %v818_v16  ;;  %v810_v7 = vadd.f32 %v1486_v60, %v809_v17 }
 0x272   :  { %v1183_v18 = vpop.f32.mrf.mxu0 }
 0x273   :  { %925 = vst.msk [vmem:[%s1653_s5 + $0x20] sm:$0xff] %vm920_vm1, %v810_v7  ;;  %v821_v33 = vadd.f32 %v1183_v18, %v1486_v60 }
 0x274   :  { %v812_v19 = vpop.f32.mrf.mxu0 }
 0x275   :  { %928 = vst.msk [vmem:[%s1653_s5 + $0x38] sm:$0xff] %vm920_vm1, %v821_v33  ;;  %v813_v20 = vadd.f32 %v1486_v60, %v812_v19 }
 0x276   :  { %v1186_v22 = vpop.f32.mrf.mxu0 }
 0x277   :  { %926 = vst.msk [vmem:[%s1653_s5 + $0x28] sm:$0xff] %vm920_vm1, %v813_v20  ;;  %v834_v23 = vadd.f32 %v1186_v22, %v1486_v60 }
 0x278   :  { %v825_v24 = vpop.f32.mrf.mxu0 }
 0x279   :  { %931 = vst.msk [vmem:[%s1653_s5 + $0x50] sm:$0xff] %vm920_vm1, %v834_v23  ;;  %v826_v25 = vadd.f32 %v1486_v60, %v825_v24 }
 0x27a   :  { %v1187_v26 = vpop.f32.mrf.mxu0 }
 0x27b   :  { %929 = vst.msk [vmem:[%s1653_s5 + $0x40] sm:$0xff] %vm920_vm1, %v826_v25  ;;  %v837_v27 = vadd.f32 %v1187_v26, %v1486_v60 }
 0x27c   :  { %v828_v28 = vpop.f32.mrf.mxu0 }
 0x27d   :  { %932 = vst.msk [vmem:[%s1653_s5 + $0x58] sm:$0xff] %vm920_vm1, %v837_v27  ;;  %v829_v29 = vadd.f32 %v1486_v60, %v828_v28 }
 0x27e   :  { %v1190_v30 = vpop.f32.mrf.mxu0 }
 0x27f   :  { %930 = vst.msk [vmem:[%s1653_s5 + $0x48] sm:$0xff] %vm920_vm1, %v829_v29  ;;  %v850_v31 = vadd.f32 %v1190_v30, %v1486_v60 }
 0x280   :  { %v841_v32 = vpop.f32.mrf.mxu0 }
 0x281   :  { %935 = vst.msk [vmem:[%s1653_s5 + $0x70] sm:$0xff] %vm920_vm1, %v850_v31  ;;  %v842_v35 = vadd.f32 %v1486_v60, %v841_v32 }
 0x282   :  { %v1191_v36 = vpop.f32.mrf.mxu0 }
 0x283   :  { %933 = vst.msk [vmem:[%s1653_s5 + $0x60] sm:$0xff] %vm920_vm1, %v842_v35  ;;  %v853_v37 = vadd.f32 %v1191_v36, %v1486_v60 }
 0x284   :  { %v844_v38 = vpop.f32.mrf.mxu0 }
 0x285   :  { %936 = vst.msk [vmem:[%s1653_s5 + $0x78] sm:$0xff] %vm920_vm1, %v853_v37  ;;  %v845_v39 = vadd.f32 %v1486_v60, %v844_v38 }
 0x286   :  { %v1194_v40 = vpop.f32.mrf.mxu0 }
 0x287   :  { %934 = vst.msk [vmem:[%s1653_s5 + $0x68] sm:$0xff] %vm920_vm1, %v845_v39  ;;  %v866_v41 = vadd.f32 %v1194_v40, %v1486_v60 }
 0x288   :  { %v857_v43 = vpop.f32.mrf.mxu0 }
 0x289   :  { %939 = vst.msk [vmem:[%s1653_s5 + $0x90] sm:$0xff] %vm920_vm1, %v866_v41  ;;  %v858_v44 = vadd.f32 %v1486_v60, %v857_v43 }
 0x28a   :  { %v1195_v45 = vpop.f32.mrf.mxu0 }
 0x28b   :  { %937 = vst.msk [vmem:[%s1653_s5 + $0x80] sm:$0xff] %vm920_vm1, %v858_v44  ;;  %v869_v46 = vadd.f32 %v1195_v45, %v1486_v60 }
 0x28c   :  { %v860_v47 = vpop.f32.mrf.mxu0 }
 0x28d   :  { %940 = vst.msk [vmem:[%s1653_s5 + $0x98] sm:$0xff] %vm920_vm1, %v869_v46  ;;  %v861_v48 = vadd.f32 %v1486_v60, %v860_v47 }
 0x28e   :  { %v1198_v49 = vpop.f32.mrf.mxu0 }
 0x28f   :  { %938 = vst.msk [vmem:[%s1653_s5 + $0x88] sm:$0xff] %vm920_vm1, %v861_v48  ;;  %v882_v50 = vadd.f32 %v1198_v49, %v1486_v60 }
 0x290   :  { %v873_v52 = vpop.f32.mrf.mxu0 }
 0x291   :  { %943 = vst.msk [vmem:[%s1653_s5 + $0xb0] sm:$0xff] %vm920_vm1, %v882_v50  ;;  %v874_v53 = vadd.f32 %v1486_v60, %v873_v52 }
 0x292   :  { %v1199_v54 = vpop.f32.mrf.mxu0 }
 0x293   :  { %941 = vst.msk [vmem:[%s1653_s5 + $0xa0] sm:$0xff] %vm920_vm1, %v874_v53  ;;  %v885_v55 = vadd.f32 %v1199_v54, %v1486_v60 }
 0x294   :  { %v876_v56 = vpop.f32.mrf.mxu0 }
 0x295   :  { %944 = vst.msk [vmem:[%s1653_s5 + $0xb8] sm:$0xff] %vm920_vm1, %v885_v55  ;;  %v877_v57 = vadd.f32 %v1486_v60, %v876_v56 }
 0x296   :  { %v1202_v58 = vpop.f32.mrf.mxu0 }
 0x297   :  { %942 = vst.msk [vmem:[%s1653_s5 + $0xa8] sm:$0xff] %vm920_vm1, %v877_v57  ;;  %v898_v34 = vadd.f32 %v1202_v58, %v1486_v60 }
 0x298   :  { %v889_v42 = vpop.f32.mrf.mxu0 }
 0x299   :  { %947 = vst.msk [vmem:[%s1653_s5 + $0xd0] sm:$0xff] %vm920_vm1, %v898_v34  ;;  %v890_v59 = vadd.f32 %v1486_v60, %v889_v42 }
 0x29a   :  { %v1203_v61 = vpop.f32.mrf.mxu0 }
 0x29b   :  { %945 = vst.msk [vmem:[%s1653_s5 + $0xc0] sm:$0xff] %vm920_vm1, %v890_v59  ;;  %v901_v62 = vadd.f32 %v1203_v61, %v1486_v60 }
 0x29c   :  { %v892_v63 = vpop.f32.mrf.mxu0 }
 0x29d   :  { %948 = vst.msk [vmem:[%s1653_s5 + $0xd8] sm:$0xff] %vm920_vm1, %v901_v62  ;;  %v893_v0 = vadd.f32 %v1486_v60, %v892_v63 }
 0x29e   :  { %v1206_v1 = vpop.f32.mrf.mxu0 }
 0x29f   :  { %946 = vst.msk [vmem:[%s1653_s5 + $0xc8] sm:$0xff] %vm920_vm1, %v893_v0  ;;  %v914_v2 = vadd.f32 %v1206_v1, %v1486_v60 }
 0x2a0   :  { %v905_v3 = vpop.f32.mrf.mxu0 }
 0x2a1   :  { %951 = vst.msk [vmem:[%s1653_s5 + $0xf0] sm:$0xff] %vm920_vm1, %v914_v2  ;;  %v906_v4 = vadd.f32 %v1486_v60, %v905_v3 }
 0x2a2   :  { %v1207_v5 = vpop.f32.mrf.mxu0 }
 0x2a3   :  { %949 = vst.msk [vmem:[%s1653_s5 + $0xe0] sm:$0xff] %vm920_vm1, %v906_v4  ;;  %v917_v51 = vadd.f32 %v1207_v5, %v1486_v60 }
 0x2a4   :  { %v908_v6 = vpop.f32.mrf.mxu0 }
 0x2a5   :  { %952 = vst.msk [vmem:[%s1653_s5 + $0xf8] sm:$0xff] %vm920_vm1, %v917_v51  ;;  %v909_v8 = vadd.f32 %v1486_v60, %v908_v6 }
 0x2a7   :  { %950 = vst.msk [vmem:[%s1653_s5 + $0xe8] sm:$0xff] %vm920_vm1, %v909_v8 }

</bundles_post_ra>
